<compile_context>
chip_gen: v7x
topology: tpu7x:2x2x1
jax: 0.10.0
libtpu: 0.0.40
codegen_flags: <defaults>
</compile_context>

<pallas_src>
import functools

import jax
import jax.numpy as jnp
from jax.experimental import pallas as pl
from jax.experimental.pallas import tpu as pltpu


def _mlp_kernel(x_ref, p1_ref, p2_ref, o_ref, *, n_feature, n_hidden):
    """relu(x @ W1 + b1) @ W2 + b2 with biases folded into packed params.

    p1: (n_feature + 1, n_hidden)  rows [0, n_feature) = W1^T, last row = b1
    p2: (n_hidden + 1, n_out_pad)  rows [0, n_hidden)  = W2^T (zero-padded
                                   lanes), last row = b2 (zero-padded)
    """
    x = x_ref[...]
    p1 = p1_ref[...]

    # ---- layer 1: K == n_feature (2) is far too shallow for the MXU; do it
    # on the VPU as statically-unrolled broadcast multiply-adds.
    h = p1[n_feature:n_feature + 1, :]            # bias row, broadcasts over batch
    for f in range(n_feature):                    # static unroll (n_feature = 2)
        h = h + x[:, f:f + 1] * p1[f:f + 1, :]
    h = jnp.maximum(h, 0.0)

    # ---- layer 2: K == n_hidden (32) -> MXU matmul into a lane-dense slab.
    out = jnp.dot(h, p2_ref[0:n_hidden, :], preferred_element_type=jnp.float32)
    out = out + p2_ref[n_hidden:n_hidden + 1, :]  # bias row (zero-padded lanes)
    o_ref[...] = out.astype(o_ref.dtype)


def pack_params(w1, b1, w2, b2, n_out_pad):
    """One-time packing (done at parameter-creation time, NOT per forward).

    w1: (n_hidden, n_feature), b1: (n_hidden,)
    w2: (n_output, n_hidden),  b2: (n_output,)
    """
    n_hidden, _ = w1.shape
    n_output = w2.shape[0]
    p1 = jnp.concatenate([w1.T, b1[None, :]], axis=0)          # (n_feature+1, n_hidden)
    w2t = jnp.zeros((n_hidden, n_out_pad), w2.dtype).at[:, :n_output].set(w2.T)
    b2p = jnp.zeros((1, n_out_pad), b2.dtype).at[:, :n_output].set(b2[None, :])
    p2 = jnp.concatenate([w2t, b2p], axis=0)                    # (n_hidden+1, n_out_pad)
    return p1, p2


def make_net_forward(n_feature, n_hidden, n_output):
    """Returns a jitted forward fn taking (x, p1, p2) -> (B, n_output)."""
    n_out_pad = max(128, pl.cdiv(n_output, 128) * 128)          # lane-dense output slab
    kernel = functools.partial(_mlp_kernel, n_feature=n_feature, n_hidden=n_hidden)
    vmem = pl.BlockSpec(memory_space=pltpu.MemorySpace.VMEM)

    @jax.jit
    def net_forward(x, p1, p2):
        B = x.shape[0]
        # Tiny problem -> single grid point, all operands fully resident in VMEM
        # (few hundred KiB, far under every generation's VMEM limit).
        out_pad = pl.pallas_call(
            kernel,
            out_shape=jax.ShapeDtypeStruct((B, n_out_pad), x.dtype),
            in_specs=[vmem, vmem, vmem],
            out_specs=vmem,
        )(x, p1, p2)
        return out_pad[:, :n_output]

    return net_forward, n_out_pad


if __name__ == "__main__":
    # Shapes implied by the PyTorch script: 2-feature points, 200 = 2*100 rows.
    B, n_feature, n_hidden, n_output = 200, 2, 32, 2

    key = jax.random.PRNGKey(0)
    kx0, kx1, kw1, kb1, kw2, kb2 = jax.random.split(key, 6)

    # Reproduce the data construction: normal(+2, 1) and normal(-2, 1), concatenated.
    x0 = 2.0 + jax.random.normal(kx0, (B // 2, n_feature), dtype=jnp.float32)
    x1 = -2.0 + jax.random.normal(kx1, (B // 2, n_feature), dtype=jnp.float32)
    x = jnp.concatenate([x0, x1], axis=0)

    # Deterministic parameter init (PyTorch Linear shapes: weight (out, in), bias (out,)).
    w1 = 0.1 * jax.random.normal(kw1, (n_hidden, n_feature), dtype=jnp.float32)
    b1 = 0.1 * jax.random.normal(kb1, (n_hidden,), dtype=jnp.float32)
    w2 = 0.1 * jax.random.normal(kw2, (n_output, n_hidden), dtype=jnp.float32)
    b2 = 0.1 * jax.random.normal(kb2, (n_output,), dtype=jnp.float32)

    # Pack / transpose weights ONCE (outside the per-call hot path).
    net_forward, n_out_pad = make_net_forward(n_feature, n_hidden, n_output)
    p1, p2 = pack_params(w1, b1, w2, b2, n_out_pad)
    p1, p2 = jax.block_until_ready((p1, p2))

    out = net_forward(x, p1, p2)
    jax.block_until_ready(out)

    # Reference check in plain JAX (same math as PyTorch forward).
    ref = jnp.maximum(x @ w1.T + b1, 0.0) @ w2.T + b2
    assert out.shape == (B, n_output)
    assert jnp.allclose(out, ref, atol=1e-5, rtol=1e-5)

    print("KERNEL_OK")
</pallas_src>

<mosaic_0001>
module attributes {stable_mosaic.version = 11 : i64} {
  func.func @_mlp_kernel(%arg0: memref<200x2xf32, #tpu.memory_space<vmem>>, %arg1: memref<3x32xf32, #tpu.memory_space<vmem>>, %arg2: memref<33x128xf32, #tpu.memory_space<vmem>>, %arg3: memref<200x128xf32, #tpu.memory_space<vmem>>) attributes {dimension_semantics = [], scalar_prefetch = 0 : i64, scratch_operands = 0 : i64, tpu.core_type = #tpu.core_type<tc>} {
    %c0 = arith.constant 0 : index
    %c0_0 = arith.constant 0 : index
    %0 = vector.load %arg0[%c0, %c0_0] : memref<200x2xf32, #tpu.memory_space<vmem>>, vector<200x2xf32>
    %c0_1 = arith.constant 0 : index
    %c0_2 = arith.constant 0 : index
    %1 = vector.load %arg1[%c0_1, %c0_2] : memref<3x32xf32, #tpu.memory_space<vmem>>, vector<3x32xf32>
    %2 = vector.extract_strided_slice %1 {offsets = [2, 0], sizes = [1, 32], strides = [1, 1]} : vector<3x32xf32> to vector<1x32xf32>
    %3 = vector.extract_strided_slice %0 {offsets = [0, 0], sizes = [200, 1], strides = [1, 1]} : vector<200x2xf32> to vector<200x1xf32>
    %4 = vector.extract_strided_slice %1 {offsets = [0, 0], sizes = [1, 32], strides = [1, 1]} : vector<3x32xf32> to vector<1x32xf32>
    %5 = vector.broadcast %3 : vector<200x1xf32> to vector<200x32xf32>
    %6 = vector.broadcast %4 : vector<1x32xf32> to vector<200x32xf32>
    %7 = arith.mulf %5, %6 : vector<200x32xf32>
    %8 = vector.broadcast %2 : vector<1x32xf32> to vector<200x32xf32>
    %9 = arith.addf %8, %7 : vector<200x32xf32>
    %10 = vector.extract_strided_slice %0 {offsets = [0, 1], sizes = [200, 1], strides = [1, 1]} : vector<200x2xf32> to vector<200x1xf32>
    %11 = vector.extract_strided_slice %1 {offsets = [1, 0], sizes = [1, 32], strides = [1, 1]} : vector<3x32xf32> to vector<1x32xf32>
    %12 = vector.broadcast %10 : vector<200x1xf32> to vector<200x32xf32>
    %13 = vector.broadcast %11 : vector<1x32xf32> to vector<200x32xf32>
    %14 = arith.mulf %12, %13 : vector<200x32xf32>
    %15 = arith.addf %9, %14 : vector<200x32xf32>
    %cst = arith.constant 0.000000e+00 : f32
    %16 = vector.broadcast %cst : f32 to vector<200x32xf32>
    %17 = arith.maximumf %15, %16 : vector<200x32xf32>
    %c0_3 = arith.constant 0 : index
    %c0_4 = arith.constant 0 : index
    %18 = vector.load %arg2[%c0_3, %c0_4] : memref<33x128xf32, #tpu.memory_space<vmem>>, vector<32x128xf32>
    %cst_5 = arith.constant dense<0.000000e+00> : vector<200x128xf32>
    %19 = tpu.matmul %17, %18, %cst_5 {dimension_numbers = #tpu.dot_dimension_numbers<[1], [0], [0], [1], [0, 0, 1, 1], [], []>} : vector<200x32xf32>, vector<32x128xf32>, vector<200x128xf32> -> vector<200x128xf32>
    %c32 = arith.constant 32 : index
    %c0_6 = arith.constant 0 : index
    %20 = vector.load %arg2[%c32, %c0_6] : memref<33x128xf32, #tpu.memory_space<vmem>>, vector<1x128xf32>
    %21 = vector.broadcast %20 : vector<1x128xf32> to vector<200x128xf32>
    %22 = arith.addf %19, %21 : vector<200x128xf32>
    %c0_7 = arith.constant 0 : index
    %c0_8 = arith.constant 0 : index
    %23 = vector.load %arg3[%c0_7, %c0_8] : memref<200x128xf32, #tpu.memory_space<vmem>>, vector<200x128xf32>
    tpu.vector_store %arg3[%c0_7, %c0_8], %22 {strides = array<i32>} : memref<200x128xf32, #tpu.memory_space<vmem>>, vector<200x128xf32>,
    return
  }
}

</mosaic_0001>

<bundles_post_ra>
// kernel: net_forward.1
= control target key start
LH: loop header
LB: loop body
LE: loop exit
PB: predicated region body
PF: predicated region fallthrough
CT: control target
= control target key end

     0   :  { %v887_v0 = vmov 0   ;;  %v888_v4 = vmov 0.0|0.0   ;;  %v889_v5 = vmov 1   ;;  %vm890_vm0 = vmmov 0   ;;  %s1304_s0 = inlined_call_operand.vmem [shape: f32[200,2], index: 0, kind: input, shape index: {}]   ;;  %s1305_s2 = inlined_call_operand.vmem [shape: f32[33,128], index: 2, kind: input, shape index: {}]   ;;  %s1306_s1 = inlined_call_operand.vmem [shape: f32[3,32], index: 1, kind: input, shape index: {}]   ;;  %s1307_s3 = inlined_call_operand.vmem [shape: f32[200,128], index: 3, kind: output, shape index: {}]  }
   0x1   :  { %861 = vset.pattern.permute.xlu1 %v887_v0  ;;  %859 = vset.pattern.permute.xlu0 %v887_v0  ;;  %v15_v1 = vld [vmem:[%s1304_s0 + $0x8] sm:$0xff]  ;;  %v14_v2 = vld [vmem:[%s1304_s0] sm:$0xff]  ;;  %v404_v9 = vld [vmem:[%s1305_s2 + $0x10] sm:$0xff]  ;;  %v891_v14 = vmov 0.0   ;;  %v165_v33 = vlaneseq  ;;  %vm411_vm1 = vcmask 261120  }
   0x2   :  { %47 = vperm.xlu1 %861, %v15_v1   ;;  %42 = vperm.xlu0 %859, %v14_v2   ;;  %v27_v3 = vld [vmem:[%s1304_s0 + $0x68] sm:$0xff]  ;;  %v402_v6 = vld [vmem:[%s1305_s2] sm:$0xff]  ;;  %v405_v10 = vld [vmem:[%s1305_s2 + $0x18] sm:$0xff] }
   0x3   :  { %844 = vmatprep.subr.bf16.mxu0 %v888_v4  ;;  %850 = vmatprep.subr.bf16.mxu1 %v888_v4  ;;  %v403_v7 = vld [vmem:[%s1305_s2 + $0x8] sm:$0xff]  ;;  %v17_v11 = vld [vmem:[%s1304_s0 + $0x18] sm:$0xff]  ;;  %v848_v12 = vpack.c.bf16 %v405_v10, %v404_v9  ;;  %v16_v13 = vld [vmem:[%s1304_s0 + $0x10] sm:$0xff]  ;;  %v166_v34 = vshrl.u32 %v165_v33, 7 }
   0x4   :  { %v845_v8 = vpack.c.bf16 %v403_v7, %v402_v6  ;;  %769 = vmatprep.mubr.msk.f32.mxu0 %vm890_vm0, %v891_v14  ;;  %808 = vmatprep.mubr.msk.f32.mxu1 %vm890_vm0, %v891_v14  ;;  %v19_v15 = vld [vmem:[%s1304_s0 + $0x28] sm:$0xff]  ;;  %v21_v16 = vld [vmem:[%s1304_s0 + $0x38] sm:$0xff]  ;;  %v28_v17 = vld [vmem:[%s1304_s0 + $0x70] sm:$0xff] }
   0x5   :  { %v23_v18 = vld [vmem:[%s1304_s0 + $0x48] sm:$0xff]  ;;  %v29_v19 = vld [vmem:[%s1304_s0 + $0x78] sm:$0xff]  ;;  %v18_v21 = vld [vmem:[%s1304_s0 + $0x20] sm:$0xff]  ;;  %v167_v36 = vsub.s32 0, %v166_v34  ;;  %v196_v38 = vsub.s32 2, %v166_v34  ;;  %v325_v39 = vsub.s32 1, %v166_v34 }
   0x6   :  { %107 = vperm.xlu1 %861, %v27_v3   ;;  %860 = vset.pattern.permute.xlu0 %v889_v5  ;;  %v25_v20 = vld [vmem:[%s1304_s0 + $0x58] sm:$0xff]  ;;  %v30_v22 = vld [vmem:[%s1304_s0 + $0x80] sm:$0xff]  ;;  %v32_v23 = vld [vmem:[%s1304_s0 + $0x90] sm:$0xff] }
   0x7   :  { %224 = vperm.xlu0 %860, %v14_v2   ;;  %846 = vmatpush3.bf16.msra.mxu0 %v845_v8  ;;  %v31_v24 = vld [vmem:[%s1304_s0 + $0x88] sm:$0xff]  ;;  %v34_v25 = vld [vmem:[%s1304_s0 + $0xa0] sm:$0xff]  ;;  %v20_v26 = vld [vmem:[%s1304_s0 + $0x30] sm:$0xff] }
   0x8   :  { %852 = vmatpush3.bf16.msra.mxu1 %v845_v8  ;;  %847 = vmatprep.subr.bf16.mxu0 %v888_v4  ;;  %v36_v27 = vld [vmem:[%s1304_s0 + $0xb0] sm:$0xff]  ;;  %v1000_v28 = vld [vmem:[%s1304_s0 + $0xc0] sm:$0xff]  ;;  %v33_v29 = vld [vmem:[%s1304_s0 + $0x98] sm:$0xff] }
   0x9   :  { %851 = vmatprep.subr.bf16.mxu1 %v888_v4  ;;  %v22_v30 = vld [vmem:[%s1304_s0 + $0x40] sm:$0xff]  ;;  %v35_v31 = vld [vmem:[%s1304_s0 + $0xa8] sm:$0xff]  ;;  %v24_v32 = vld [vmem:[%s1304_s0 + $0x50] sm:$0xff] }
   0xa   :  { %862 = vset.pattern.permute.xlu1 %v889_v5  ;;  %v37_v35 = vld [vmem:[%s1304_s0 + $0xb8] sm:$0xff]  ;;  %v39_v37 = vld [vmem:[%s1306_s1] sm:$0x7] }
   0xb   :  { %228 = vperm.xlu1 %862, %v15_v1   ;;  %276 = vperm.xlu0 %860, %v27_v3   ;;  %v1031_v40 = vrot.slane %v39_v37, %v167_v36  ;;  %v1035_v44 = vrot.slane %v39_v37, %v196_v38  ;;  %v1037_v45 = vrot.slane %v39_v37, %v325_v39  ;;  %v26_v48 = vld [vmem:[%s1304_s0 + $0x60] sm:$0xff] }
   0xc   :  { %849 = vmatpush3.bf16.msra.mxu0 %v848_v12  ;;  %853 = vmatpush3.bf16.msra.mxu1 %v848_v12 }
   0xf   :  { %863 = vset.pattern.permute.xlu1 %v887_v0  ;;  %236 = vperm.xlu0 %860, %v17_v11  }
  0x10   :  { %52 = vperm.xlu1 %863, %v16_v13  }
  0x13   :  { %244 = vperm.xlu0 %860, %v19_v15  }
  0x14   :  { %864 = vset.pattern.permute.xlu1 %v889_v5 }
  0x15   :  { %232 = vperm.xlu1 %864, %v16_v13  }
  0x17   :  { %252 = vperm.xlu0 %860, %v21_v16  }
  0x19   :  { %280 = vperm.xlu1 %864, %v28_v17  }
  0x1b   :  { %260 = vperm.xlu0 %860, %v23_v18  }
  0x1d   :  { %865 = vset.pattern.permute.xlu1 %v887_v0 }
  0x1e   :  { %117 = vperm.xlu1 %865, %v29_v19  }
  0x1f   :  { %268 = vperm.xlu0 %860, %v25_v20  }
  0x22   :  { %866 = vset.pattern.permute.xlu1 %v889_v5 }
  0x23   :  { %284 = vperm.xlu1 %866, %v29_v19   ;;  %882 = vset.pattern.permute.xlu0 %v887_v0 }
  0x24   :  { %112 = vperm.xlu0 %882, %v28_v17  }
  0x27   :  { %867 = vset.pattern.permute.xlu1 %v887_v0 }
  0x28   :  { %62 = vperm.xlu1 %867, %v18_v21   ;;  %57 = vperm.xlu0 %882, %v17_v11  }
  0x2c   :  { %868 = vset.pattern.permute.xlu1 %v889_v5  ;;  %122 = vperm.xlu0 %882, %v30_v22  }
  0x2d   :  { %240 = vperm.xlu1 %868, %v18_v21  }
  0x30   :  { %67 = vperm.xlu0 %882, %v19_v15  }
  0x31   :  { %288 = vperm.xlu1 %868, %v30_v22  }
  0x34   :  { %132 = vperm.xlu0 %882, %v32_v23  }
  0x35   :  { %869 = vset.pattern.permute.xlu1 %v887_v0 }
  0x36   :  { %127 = vperm.xlu1 %869, %v31_v24  }
  0x38   :  { %77 = vperm.xlu0 %882, %v21_v16  }
  0x3a   :  { %870 = vset.pattern.permute.xlu1 %v889_v5 }
  0x3b   :  { %292 = vperm.xlu1 %870, %v31_v24  }
  0x3c   :  { %142 = vperm.xlu0 %882, %v34_v25  }
  0x3f   :  { %871 = vset.pattern.permute.xlu1 %v887_v0 }
  0x40   :  { %72 = vperm.xlu1 %871, %v20_v26   ;;  %87 = vperm.xlu0 %882, %v23_v18  }
  0x44   :  { %872 = vset.pattern.permute.xlu1 %v889_v5  ;;  %152 = vperm.xlu0 %882, %v36_v27  }
  0x45   :  { %248 = vperm.xlu1 %872, %v20_v26  }
  0x48   :  { %97 = vperm.xlu0 %882, %v25_v20  }
  0x49   :  { %296 = vperm.xlu1 %872, %v32_v23  }
  0x4c   :  { %162 = vperm.xlu0 %882, %v1000_v28  }
  0x4d   :  { %873 = vset.pattern.permute.xlu1 %v887_v0 }
  0x4e   :  { %137 = vperm.xlu1 %873, %v33_v29  }
  0x50   :  { %886 = vset.pattern.permute.xlu0 %v889_v5 }
  0x52   :  { %874 = vset.pattern.permute.xlu1 %v889_v5 }
  0x53   :  { %300 = vperm.xlu1 %874, %v33_v29  }
  0x57   :  { %875 = vset.pattern.permute.xlu1 %v887_v0 }
  0x58   :  { %82 = vperm.xlu1 %875, %v22_v30  }
  0x5c   :  { %876 = vset.pattern.permute.xlu1 %v889_v5 }
  0x5d   :  { %256 = vperm.xlu1 %876, %v22_v30  }
  0x61   :  { %304 = vperm.xlu1 %876, %v34_v25  }
  0x65   :  { %877 = vset.pattern.permute.xlu1 %v887_v0 }
  0x66   :  { %147 = vperm.xlu1 %877, %v35_v31  }
  0x6a   :  { %878 = vset.pattern.permute.xlu1 %v889_v5 }
  0x6b   :  { %308 = vperm.xlu1 %878, %v35_v31  }
  0x6f   :  { %879 = vset.pattern.permute.xlu1 %v887_v0 }
  0x70   :  { %92 = vperm.xlu1 %879, %v24_v32  }
  0x74   :  { %880 = vset.pattern.permute.xlu1 %v889_v5 }
  0x75   :  { %264 = vperm.xlu1 %880, %v24_v32  }
  0x79   :  { %312 = vperm.xlu1 %880, %v36_v27  }
  0x7d   :  { %881 = vset.pattern.permute.xlu1 %v887_v0 }
  0x7e   :  { %157 = vperm.xlu1 %881, %v37_v35  }
  0x81   :  { %v48_v41 = vpop.permute.xlu1 %47  ;;  %v43_v42 = vpop.permute.xlu0 %42 }
  0x82   :  { %883 = vset.pattern.permute.xlu1 %v889_v5  ;;  %v169_v43 = vmul.f32 %v1031_v40, %v43_v42  ;;  %v170_v49 = vmul.f32 %v1031_v40, %v48_v41 }
  0x83   :  { %316 = vperm.xlu1 %883, %v37_v35  }
  0x84   :  { %v198_v46 = vadd.f32 %v1035_v44, %v169_v43  ;;  %v199_v54 = vadd.f32 %v1035_v44, %v170_v49 }
  0x85   :  { %v108_v47 = vpop.permute.xlu1 %107 }
  0x86   :  { %v225_v50 = vpop.permute.xlu0 %224  ;;  %v182_v51 = vmul.f32 %v1031_v40, %v108_v47 }
  0x87   :  { %v327_v52 = vmul.f32 %v1037_v45, %v225_v50  ;;  %884 = vset.pattern.permute.xlu1 %v887_v0 }
  0x88   :  { %102 = vperm.xlu1 %884, %v26_v48   ;;  %v211_v57 = vadd.f32 %v1035_v44, %v182_v51 }
  0x89   :  { %v352_v53 = vadd.f32 %v327_v52, %v198_v46 }
  0x8a   :  { %v229_v55 = vpop.permute.xlu1 %228  ;;  %v277_v56 = vpop.permute.xlu0 %276 }
  0x8b   :  { %v377_v58 = vmax.f32 %v352_v53, 0.0  ;;  %v328_v59 = vmul.f32 %v1037_v45, %v229_v55  ;;  %v340_v60 = vmul.f32 %v1037_v45, %v277_v56 }
  0x8c   :  { %885 = vset.pattern.permute.xlu1 %v889_v5 }
  0x8d   :  { %v353_v61 = vadd.f32 %v328_v59, %v199_v54  ;;  %v365_v62 = vadd.f32 %v340_v60, %v211_v57  ;;  %272 = vperm.xlu1 %885, %v26_v48   ;;  %770 = vmatmul.mubr.msk.f32.vlgmr.msra.gmra.mrb[0].mxu0 %vm411_vm1, %v377_v58 }
  0x8e   :  { %v237_v63 = vpop.permute.xlu0 %236  ;;  %772 = vmatprep.mubr.msk.f32.mxu0 %vm890_vm0, %v891_v14 }
  0x8f   :  { %v378_v0 = vmax.f32 %v353_v61, 0.0  ;;  %v390_v1 = vmax.f32 %v365_v62, 0.0  ;;  %v53_v2 = vpop.permute.xlu1 %52  ;;  %v330_v25 = vmul.f32 %v1037_v45, %v237_v63 }
  0x90   :  { %v171_v3 = vmul.f32 %v1031_v40, %v53_v2 }
  0x91   :  { %320 = vperm.xlu1 %885, %v1000_v28   ;;  %773 = vmatmul.mubr.msk.f32.gmra.mrb[2].mxu0 %vm411_vm1, %v378_v0 }
  0x92   :  { %809 = vmatmul.mubr.msk.f32.vlgmr.msra.gmra.mrb[0].mxu1 %vm411_vm1, %v390_v1  ;;  %v245_v4 = vpop.permute.xlu0 %244  ;;  %775 = vmatprep.mubr.msk.f32.mxu0 %vm890_vm0, %v891_v14  ;;  %v200_v6 = vadd.f32 %v1035_v44, %v171_v3 }
  0x93   :  { %811 = vmatprep.mubr.msk.f32.mxu1 %vm890_vm0, %v891_v14  ;;  %v332_v47 = vmul.f32 %v1037_v45, %v245_v4 }
  0x94   :  { %v233_v5 = vpop.permute.xlu1 %232 }
  0x95   :  { %v329_v7 = vmul.f32 %v1037_v45, %v233_v5 }
  0x96   :  { %v1065_v8 = vpop.permute.xlu0 %252 }
  0x97   :  { %v354_v9 = vadd.f32 %v329_v7, %v200_v6  ;;  %v334_v5 = vmul.f32 %v1037_v45, %v1065_v8 }
  0x98   :  { %v281_v10 = vpop.permute.xlu1 %280 }
  0x99   :  { %v379_v11 = vmax.f32 %v354_v9, 0.0  ;;  %v341_v20 = vmul.f32 %v1037_v45, %v281_v10 }
  0x9a   :  { %v1067_v12 = vpop.permute.xlu0 %260 }
  0x9b   :  { %776 = vmatmul.mubr.msk.f32.gmra.mrb[4].mxu0 %vm411_vm1, %v379_v11 }
  0x9c   :  { %778 = vmatprep.mubr.msk.f32.mxu0 %vm890_vm0, %v891_v14 }
  0x9d   :  { %v118_v13 = vpop.permute.xlu1 %117 }
  0x9e   :  { %v1072_v15 = vpop.permute.xlu0 %268  ;;  %v184_v18 = vmul.f32 %v1031_v40, %v118_v13 }
  0xa0   :  { %v213_v26 = vadd.f32 %v1035_v44, %v184_v18 }
  0xa2   :  { %v285_v16 = vpop.permute.xlu1 %284 }
  0xa3   :  { %v113_v17 = vpop.permute.xlu0 %112  ;;  %v342_v21 = vmul.f32 %v1037_v45, %v285_v16 }
  0xa4   :  { %v183_v19 = vmul.f32 %v1031_v40, %v113_v17 }
  0xa5   :  { %v367_v30 = vadd.f32 %v342_v21, %v213_v26 }
  0xa6   :  { %v212_v22 = vadd.f32 %v1035_v44, %v183_v19 }
  0xa7   :  { %v63_v23 = vpop.permute.xlu1 %62  ;;  %v58_v24 = vpop.permute.xlu0 %57  ;;  %v392_v39 = vmax.f32 %v367_v30, 0.0 }
  0xa8   :  { %v366_v27 = vadd.f32 %v341_v20, %v212_v22  ;;  %v172_v28 = vmul.f32 %v1031_v40, %v58_v24  ;;  %v173_v29 = vmul.f32 %v1031_v40, %v63_v23 }
  0xaa   :  { %v391_v31 = vmax.f32 %v366_v27, 0.0  ;;  %v201_v32 = vadd.f32 %v1035_v44, %v172_v28  ;;  %v202_v37 = vadd.f32 %v1035_v44, %v173_v29 }
  0xab   :  { %v123_v33 = vpop.permute.xlu0 %122 }
  0xac   :  { %v355_v34 = vadd.f32 %v330_v25, %v201_v32  ;;  %v185_v35 = vmul.f32 %v1031_v40, %v123_v33  ;;  %v241_v36 = vpop.permute.xlu1 %240  ;;  %812 = vmatmul.mubr.msk.f32.gmra.mrb[2].mxu1 %vm411_vm1, %v391_v31 }
  0xad   :  { %v331_v38 = vmul.f32 %v1037_v45, %v241_v36  ;;  %814 = vmatprep.mubr.msk.f32.mxu1 %vm890_vm0, %v891_v14 }
  0xae   :  { %v380_v41 = vmax.f32 %v355_v34, 0.0  ;;  %v214_v42 = vadd.f32 %v1035_v44, %v185_v35 }
  0xaf   :  { %v356_v43 = vadd.f32 %v331_v38, %v202_v37  ;;  %v68_v46 = vpop.permute.xlu0 %67  ;;  %v336_v37 = vmul.f32 %v1037_v45, %v1067_v12 }
  0xb0   :  { %v174_v48 = vmul.f32 %v1031_v40, %v68_v46  ;;  %v289_v49 = vpop.permute.xlu1 %288  ;;  %779 = vmatmul.mubr.msk.f32.gmra.mrb[6].mxu0 %vm411_vm1, %v380_v41  ;;  %815 = vmatmul.mubr.msk.f32.gmra.mrb[4].mxu1 %vm411_vm1, %v392_v39 }
  0xb1   :  { %v381_v50 = vmax.f32 %v356_v43, 0.0  ;;  %v343_v51 = vmul.f32 %v1037_v45, %v289_v49  ;;  %781 = vmatprep.mubr.msk.f32.mxu0 %vm890_vm0, %v891_v14  ;;  %817 = vmatprep.mubr.msk.f32.mxu1 %vm890_vm0, %v891_v14 }
  0xb2   :  { %v203_v52 = vadd.f32 %v1035_v44, %v174_v48 }
  0xb3   :  { %v368_v53 = vadd.f32 %v343_v51, %v214_v42  ;;  %v133_v59 = vpop.permute.xlu0 %132 }
  0xb4   :  { %v357_v54 = vadd.f32 %v332_v47, %v203_v52  ;;  %782 = vmatmul.mubr.msk.f32.gmra.mrb[8].mxu0 %vm411_vm1, %v381_v50  ;;  %v187_v6 = vmul.f32 %v1031_v40, %v133_v59 }
  0xb5   :  { %v393_v55 = vmax.f32 %v368_v53, 0.0  ;;  %v128_v56 = vpop.permute.xlu1 %127  ;;  %784 = vmatprep.mubr.msk.f32.mxu0 %vm890_vm0, %v891_v14 }
  0xb6   :  { %v382_v57 = vmax.f32 %v357_v54, 0.0  ;;  %v186_v58 = vmul.f32 %v1031_v40, %v128_v56  ;;  %v216_v13 = vadd.f32 %v1035_v44, %v187_v6 }
  0xb7   :  { %818 = vmatmul.mubr.msk.f32.gmra.mrb[6].mxu1 %vm411_vm1, %v393_v55  ;;  %v78_v0 = vpop.permute.xlu0 %77 }
  0xb8   :  { %820 = vmatprep.mubr.msk.f32.mxu1 %vm890_vm0, %v891_v14  ;;  %785 = vmatmul.mubr.msk.f32.gmra.mrb[10].mxu0 %vm411_vm1, %v382_v57  ;;  %v215_v61 = vadd.f32 %v1035_v44, %v186_v58  ;;  %v176_v1 = vmul.f32 %v1031_v40, %v78_v0  ;;  %v338_v0 = vmul.f32 %v1037_v45, %v1072_v15 }
  0xb9   :  { %787 = vmatprep.mubr.msk.f32.mxu0 %vm890_vm0, %v891_v14 }
  0xba   :  { %v293_v60 = vpop.permute.xlu1 %292  ;;  %v205_v7 = vadd.f32 %v1035_v44, %v176_v1 }
  0xbb   :  { %v344_v62 = vmul.f32 %v1037_v45, %v293_v60  ;;  %v143_v25 = vpop.permute.xlu0 %142 }
  0xbc   :  { %v359_v16 = vadd.f32 %v334_v5, %v205_v7  ;;  %v189_v35 = vmul.f32 %v1031_v40, %v143_v25 }
  0xbd   :  { %v369_v63 = vadd.f32 %v344_v62, %v215_v61 }
  0xbe   :  { %v384_v21 = vmax.f32 %v359_v16, 0.0  ;;  %v218_v42 = vadd.f32 %v1035_v44, %v189_v35 }
  0xbf   :  { %v394_v2 = vmax.f32 %v369_v63, 0.0  ;;  %v73_v3 = vpop.permute.xlu1 %72  ;;  %v88_v32 = vpop.permute.xlu0 %87 }
  0xc0   :  { %v175_v4 = vmul.f32 %v1031_v40, %v73_v3  ;;  %v178_v33 = vmul.f32 %v1031_v40, %v88_v32 }
  0xc1   :  { %821 = vmatmul.mubr.msk.f32.gmra.mrb[8].mxu1 %vm411_vm1, %v394_v2 }
  0xc2   :  { %823 = vmatprep.mubr.msk.f32.mxu1 %vm890_vm0, %v891_v14  ;;  %v204_v10 = vadd.f32 %v1035_v44, %v175_v4  ;;  %v207_v38 = vadd.f32 %v1035_v44, %v178_v33 }
  0xc3   :  { %v153_v54 = vpop.permute.xlu0 %152 }
  0xc4   :  { %v249_v9 = vpop.permute.xlu1 %248  ;;  %v361_v47 = vadd.f32 %v336_v37, %v207_v38  ;;  %v191_v2 = vmul.f32 %v1031_v40, %v153_v54 }
  0xc5   :  { %v333_v11 = vmul.f32 %v1037_v45, %v249_v9 }
  0xc6   :  { %v386_v12 = vmax.f32 %v361_v47, 0.0  ;;  %v220_v9 = vadd.f32 %v1035_v44, %v191_v2 }
  0xc7   :  { %v358_v17 = vadd.f32 %v333_v11, %v204_v10  ;;  %v98_v59 = vpop.permute.xlu0 %97 }
  0xc8   :  { %v297_v18 = vpop.permute.xlu1 %296  ;;  %v180_v62 = vmul.f32 %v1031_v40, %v98_v59 }
  0xc9   :  { %v383_v19 = vmax.f32 %v358_v17, 0.0  ;;  %v345_v20 = vmul.f32 %v1037_v45, %v297_v18 }
  0xca   :  { %v209_v3 = vadd.f32 %v1035_v44, %v180_v62 }
  0xcb   :  { %v370_v22 = vadd.f32 %v345_v20, %v216_v13  ;;  %788 = vmatmul.mubr.msk.f32.gmra.mrb[12].mxu0 %vm411_vm1, %v383_v19 }
  0xcc   :  { %790 = vmatprep.mubr.msk.f32.mxu0 %vm890_vm0, %v891_v14  ;;  %v363_v10 = vadd.f32 %v338_v0, %v209_v3 }
  0xcd   :  { %v395_v8 = vmax.f32 %v370_v22, 0.0  ;;  %v138_v23 = vpop.permute.xlu1 %137 }
  0xce   :  { %v188_v24 = vmul.f32 %v1031_v40, %v138_v23  ;;  %v388_v15 = vmax.f32 %v363_v10, 0.0 }
  0xcf   :  { %791 = vmatmul.mubr.msk.f32.gmra.mrb[14].mxu0 %vm411_vm1, %v384_v21  ;;  %824 = vmatmul.mubr.msk.f32.gmra.mrb[10].mxu1 %vm411_vm1, %v395_v8 }
  0xd0   :  { %826 = vmatprep.mubr.msk.f32.mxu1 %vm890_vm0, %v891_v14  ;;  %793 = vmatprep.mubr.msk.f32.mxu0 %vm890_vm0, %v891_v14  ;;  %v217_v27 = vadd.f32 %v1035_v44, %v188_v24 }
  0xd2   :  { %v301_v26 = vpop.permute.xlu1 %300 }
  0xd3   :  { %v346_v28 = vmul.f32 %v1037_v45, %v301_v26  ;;  %v163_v26 = vpop.permute.xlu0 %162 }
  0xd5   :  { %v371_v29 = vadd.f32 %v346_v28, %v217_v27  ;;  %v193_v28 = vmul.f32 %v1031_v40, %v163_v26 }
  0xd7   :  { %v396_v30 = vmax.f32 %v371_v29, 0.0  ;;  %v83_v31 = vpop.permute.xlu1 %82  ;;  %v222_v33 = vadd.f32 %v1035_v44, %v193_v28 }
  0xd8   :  { %v177_v34 = vmul.f32 %v1031_v40, %v83_v31 }
  0xd9   :  { %827 = vmatmul.mubr.msk.f32.gmra.mrb[12].mxu1 %vm411_vm1, %v396_v30 }
  0xda   :  { %829 = vmatprep.mubr.msk.f32.mxu1 %vm890_vm0, %v891_v14  ;;  %v206_v39 = vadd.f32 %v1035_v44, %v177_v34 }
  0xdc   :  { %v257_v36 = vpop.permute.xlu1 %256 }
  0xdd   :  { %v335_v41 = vmul.f32 %v1037_v45, %v257_v36 }
  0xdf   :  { %v360_v43 = vadd.f32 %v335_v41, %v206_v39 }
  0xe0   :  { %v305_v46 = vpop.permute.xlu1 %304 }
  0xe1   :  { %v385_v48 = vmax.f32 %v360_v43, 0.0  ;;  %v347_v49 = vmul.f32 %v1037_v45, %v305_v46 }
  0xe3   :  { %v372_v50 = vadd.f32 %v347_v49, %v218_v42  ;;  %794 = vmatmul.mubr.msk.f32.gmra.mrb[16].mxu0 %vm411_vm1, %v385_v48 }
  0xe4   :  { %796 = vmatprep.mubr.msk.f32.mxu0 %vm890_vm0, %v891_v14 }
  0xe5   :  { %v397_v51 = vmax.f32 %v372_v50, 0.0  ;;  %v148_v52 = vpop.permute.xlu1 %147 }
  0xe6   :  { %v190_v53 = vmul.f32 %v1031_v40, %v148_v52 }
  0xe7   :  { %797 = vmatmul.mubr.msk.f32.gmra.mrb[18].mxu0 %vm411_vm1, %v386_v12  ;;  %830 = vmatmul.mubr.msk.f32.gmra.mrb[14].mxu1 %vm411_vm1, %v397_v51 }
  0xe8   :  { %832 = vmatprep.mubr.msk.f32.mxu1 %vm890_vm0, %v891_v14  ;;  %799 = vmatprep.mubr.msk.f32.mxu0 %vm890_vm0, %v891_v14  ;;  %v219_v56 = vadd.f32 %v1035_v44, %v190_v53 }
  0xea   :  { %v309_v55 = vpop.permute.xlu1 %308 }
  0xeb   :  { %v348_v57 = vmul.f32 %v1037_v45, %v309_v55 }
  0xed   :  { %v373_v58 = vadd.f32 %v348_v57, %v219_v56 }
  0xef   :  { %v398_v60 = vmax.f32 %v373_v58, 0.0  ;;  %v93_v61 = vpop.permute.xlu1 %92 }
  0xf0   :  { %v179_v63 = vmul.f32 %v1031_v40, %v93_v61 }
  0xf1   :  { %833 = vmatmul.mubr.msk.f32.gmra.mrb[16].mxu1 %vm411_vm1, %v398_v60 }
  0xf2   :  { %835 = vmatprep.mubr.msk.f32.mxu1 %vm890_vm0, %v891_v14  ;;  %v208_v4 = vadd.f32 %v1035_v44, %v179_v63 }
  0xf4   :  { %v265_v1 = vpop.permute.xlu1 %264 }
  0xf5   :  { %v337_v5 = vmul.f32 %v1037_v45, %v265_v1 }
  0xf7   :  { %v362_v6 = vadd.f32 %v337_v5, %v208_v4 }
  0xf8   :  { %v313_v7 = vpop.permute.xlu1 %312 }
  0xf9   :  { %v387_v11 = vmax.f32 %v362_v6, 0.0  ;;  %v349_v13 = vmul.f32 %v1037_v45, %v313_v7 }
  0xfb   :  { %v374_v16 = vadd.f32 %v349_v13, %v220_v9  ;;  %800 = vmatmul.mubr.msk.f32.gmra.mrb[20].mxu0 %vm411_vm1, %v387_v11 }
  0xfc   :  { %802 = vmatprep.mubr.msk.f32.mxu0 %vm890_vm0, %v891_v14 }
  0xfd   :  { %v399_v17 = vmax.f32 %v374_v16, 0.0  ;;  %v158_v18 = vpop.permute.xlu1 %157 }
  0xfe   :  { %v192_v19 = vmul.f32 %v1031_v40, %v158_v18 }
  0xff   :  { %803 = vmatmul.mubr.msk.f32.gmra.mrb[22].mxu0 %vm411_vm1, %v388_v15  ;;  %836 = vmatmul.mubr.msk.f32.gmra.mrb[18].mxu1 %vm411_vm1, %v399_v17 }
 0x100   :  { %838 = vmatprep.mubr.msk.f32.mxu1 %vm890_vm0, %v891_v14  ;;  %805 = vmatprep.mubr.msk.f32.mxu0 %vm890_vm0, %v891_v14  ;;  %v221_v21 = vadd.f32 %v1035_v44, %v192_v19 }
 0x102   :  { %v317_v20 = vpop.permute.xlu1 %316 }
 0x103   :  { %v350_v22 = vmul.f32 %v1037_v45, %v317_v20 }
 0x105   :  { %v375_v8 = vadd.f32 %v350_v22, %v221_v21 }
 0x107   :  { %v400_v23 = vmax.f32 %v375_v8, 0.0  ;;  %v103_v24 = vpop.permute.xlu1 %102 }
 0x108   :  { %v181_v25 = vmul.f32 %v1031_v40, %v103_v24 }
 0x109   :  { %839 = vmatmul.mubr.msk.f32.gmra.mrb[20].mxu1 %vm411_vm1, %v400_v23 }
 0x10a   :  { %841 = vmatprep.mubr.msk.f32.mxu1 %vm890_vm0, %v891_v14  ;;  %v210_v29 = vadd.f32 %v1035_v44, %v181_v25  ;;  %v1202_v14 = vld [vmem:[%s1305_s2 + $0x20] ss:$0 sm:$0xff] }
 0x10c   :  { %v273_v27 = vpop.permute.xlu1 %272 }
 0x10d   :  { %v339_v30 = vmul.f32 %v1037_v45, %v273_v27 }
 0x10f   :  { %v364_v31 = vadd.f32 %v339_v30, %v210_v29 }
 0x110   :  { %v321_v32 = vpop.permute.xlu1 %320 }
 0x111   :  { %v389_v34 = vmax.f32 %v364_v31, 0.0  ;;  %v351_v35 = vmul.f32 %v1037_v45, %v321_v32 }
 0x113   :  { %v376_v36 = vadd.f32 %v351_v35, %v222_v33  ;;  %806 = vmatmul.mubr.msk.f32.gmra.mrb[24].mxu0 %vm411_vm1, %v389_v34 }
 0x115   :  { %v401_v37 = vmax.f32 %v376_v36, 0.0 }
 0x117   :  { %842 = vmatmul.mubr.msk.f32.gmra.mrb[22].mxu1 %vm411_vm1, %v401_v37 }
 0x160   :  { %v553_v40 = vpop.f32.mrb[0].mxu0 }
 0x161   :  { %v554_v38 = vadd.f32 %v1202_v14, %v553_v40  ;;  %v771_v39 = vpop.f32.mrb[1].mxu0 }
 0x163   :  { %677 = vst [vmem:[%s1307_s3] sm:$0xff] %v554_v38 }
 0x164   :  { %v558_v44 = vpop.f32.mrb[2].mxu0 }
 0x165   :  { %v559_v45 = vadd.f32 %v1202_v14, %v558_v44  ;;  %v618_v41 = vpop.f32.mrb[0].mxu1  ;;  %v774_v42 = vpop.f32.mrb[3].mxu0 }
 0x166   :  { %v619_v43 = vadd.f32 %v1202_v14, %v618_v41  ;;  %v810_v46 = vpop.f32.mrb[1].mxu1 }
 0x167   :  { %678 = vst [vmem:[%s1307_s3 + $0x8] sm:$0xff] %v559_v45 }
 0x168   :  { %690 = vst [vmem:[%s1307_s3 + $0x68] sm:$0xff] %v619_v43 }
 0x16e   :  { %v563_v47 = vpop.f32.mrb[4].mxu0 }
 0x16f   :  { %v564_v48 = vadd.f32 %v1202_v14, %v563_v47  ;;  %v777_v49 = vpop.f32.mrb[5].mxu0 }
 0x171   :  { %679 = vst [vmem:[%s1307_s3 + $0x10] sm:$0xff] %v564_v48 }
 0x17f   :  { %v623_v50 = vpop.f32.mrb[2].mxu1 }
 0x180   :  { %v624_v12 = vadd.f32 %v1202_v14, %v623_v50  ;;  %v813_v51 = vpop.f32.mrb[3].mxu1 }
 0x182   :  { %691 = vst [vmem:[%s1307_s3 + $0x70] sm:$0xff] %v624_v12 }
 0x183   :  { %v628_v52 = vpop.f32.mrb[4].mxu1  ;;  %v568_v53 = vpop.f32.mrb[6].mxu0 }
 0x184   :  { %v629_v54 = vadd.f32 %v1202_v14, %v628_v52  ;;  %v816_v55 = vpop.f32.mrb[5].mxu1  ;;  %v569_v56 = vadd.f32 %v1202_v14, %v568_v53  ;;  %v780_v57 = vpop.f32.mrb[7].mxu0 }
 0x186   :  { %692 = vst [vmem:[%s1307_s3 + $0x78] sm:$0xff] %v629_v54  ;;  %680 = vst [vmem:[%s1307_s3 + $0x18] sm:$0xff] %v569_v56 }
 0x187   :  { %v573_v58 = vpop.f32.mrb[8].mxu0 }
 0x188   :  { %v574_v59 = vadd.f32 %v1202_v14, %v573_v58  ;;  %v783_v60 = vpop.f32.mrb[9].mxu0 }
 0x18a   :  { %681 = vst [vmem:[%s1307_s3 + $0x20] sm:$0xff] %v574_v59  ;;  %v633_v61 = vpop.f32.mrb[6].mxu1 }
 0x18b   :  { %v634_v62 = vadd.f32 %v1202_v14, %v633_v61  ;;  %v819_v63 = vpop.f32.mrb[7].mxu1  ;;  %v578_v0 = vpop.f32.mrb[10].mxu0 }
 0x18c   :  { %v579_v1 = vadd.f32 %v1202_v14, %v578_v0  ;;  %v786_v2 = vpop.f32.mrb[11].mxu0 }
 0x18d   :  { %693 = vst [vmem:[%s1307_s3 + $0x80] sm:$0xff] %v634_v62 }
 0x18e   :  { %682 = vst [vmem:[%s1307_s3 + $0x28] sm:$0xff] %v579_v1 }
 0x194   :  { %v638_v3 = vpop.f32.mrb[8].mxu1 }
 0x195   :  { %v639_v4 = vadd.f32 %v1202_v14, %v638_v3  ;;  %v822_v5 = vpop.f32.mrb[9].mxu1 }
 0x197   :  { %694 = vst [vmem:[%s1307_s3 + $0x88] sm:$0xff] %v639_v4 }
 0x19e   :  { %v583_v6 = vpop.f32.mrb[12].mxu0 }
 0x19f   :  { %v584_v7 = vadd.f32 %v1202_v14, %v583_v6  ;;  %v789_v9 = vpop.f32.mrb[13].mxu0 }
 0x1a1   :  { %683 = vst [vmem:[%s1307_s3 + $0x30] sm:$0xff] %v584_v7 }
 0x1a2   :  { %v588_v10 = vpop.f32.mrb[14].mxu0  ;;  %v643_v11 = vpop.f32.mrb[10].mxu1 }
 0x1a3   :  { %v589_v13 = vadd.f32 %v1202_v14, %v588_v10  ;;  %v644_v16 = vadd.f32 %v1202_v14, %v643_v11  ;;  %v792_v15 = vpop.f32.mrb[15].mxu0  ;;  %v825_v17 = vpop.f32.mrb[11].mxu1 }
 0x1a5   :  { %684 = vst [vmem:[%s1307_s3 + $0x38] sm:$0xff] %v589_v13  ;;  %695 = vst [vmem:[%s1307_s3 + $0x90] sm:$0xff] %v644_v16 }
 0x1ac   :  { %v648_v18 = vpop.f32.mrb[12].mxu1 }
 0x1ad   :  { %v649_v19 = vadd.f32 %v1202_v14, %v648_v18  ;;  %v828_v20 = vpop.f32.mrb[13].mxu1 }
 0x1af   :  { %696 = vst [vmem:[%s1307_s3 + $0x98] sm:$0xff] %v649_v19 }
 0x1b6   :  { %v593_v21 = vpop.f32.mrb[16].mxu0 }
 0x1b7   :  { %v594_v22 = vadd.f32 %v1202_v14, %v593_v21  ;;  %v795_v8 = vpop.f32.mrb[17].mxu0 }
 0x1b9   :  { %685 = vst [vmem:[%s1307_s3 + $0x40] sm:$0xff] %v594_v22 }
 0x1ba   :  { %v598_v23 = vpop.f32.mrb[18].mxu0  ;;  %v653_v24 = vpop.f32.mrb[14].mxu1 }
 0x1bb   :  { %v599_v25 = vadd.f32 %v1202_v14, %v598_v23  ;;  %v654_v26 = vadd.f32 %v1202_v14, %v653_v24  ;;  %v798_v27 = vpop.f32.mrb[19].mxu0  ;;  %v831_v28 = vpop.f32.mrb[15].mxu1 }
 0x1bd   :  { %686 = vst [vmem:[%s1307_s3 + $0x48] sm:$0xff] %v599_v25  ;;  %697 = vst [vmem:[%s1307_s3 + $0xa0] sm:$0xff] %v654_v26 }
 0x1c4   :  { %v658_v29 = vpop.f32.mrb[16].mxu1 }
 0x1c5   :  { %v659_v30 = vadd.f32 %v1202_v14, %v658_v29  ;;  %v834_v31 = vpop.f32.mrb[17].mxu1 }
 0x1c7   :  { %698 = vst [vmem:[%s1307_s3 + $0xa8] sm:$0xff] %v659_v30 }
 0x1ce   :  { %v603_v32 = vpop.f32.mrb[20].mxu0 }
 0x1cf   :  { %v604_v33 = vadd.f32 %v1202_v14, %v603_v32  ;;  %v801_v34 = vpop.f32.mrb[21].mxu0 }
 0x1d1   :  { %687 = vst [vmem:[%s1307_s3 + $0x50] sm:$0xff] %v604_v33 }
 0x1d2   :  { %v608_v35 = vpop.f32.mrb[22].mxu0  ;;  %v663_v36 = vpop.f32.mrb[18].mxu1 }
 0x1d3   :  { %v609_v37 = vadd.f32 %v1202_v14, %v608_v35  ;;  %v664_v40 = vadd.f32 %v1202_v14, %v663_v36  ;;  %v804_v38 = vpop.f32.mrb[23].mxu0  ;;  %v837_v39 = vpop.f32.mrb[19].mxu1 }
 0x1d5   :  { %688 = vst [vmem:[%s1307_s3 + $0x58] sm:$0xff] %v609_v37  ;;  %699 = vst [vmem:[%s1307_s3 + $0xb0] sm:$0xff] %v664_v40 }
 0x1dc   :  { %v668_v44 = vpop.f32.mrb[20].mxu1 }
 0x1dd   :  { %v669_v45 = vadd.f32 %v1202_v14, %v668_v44  ;;  %v840_v41 = vpop.f32.mrb[21].mxu1 }
 0x1df   :  { %700 = vst [vmem:[%s1307_s3 + $0xb8] sm:$0xff] %v669_v45 }
 0x1e6   :  { %v613_v42 = vpop.f32.mrb[24].mxu0 }
 0x1e7   :  { %v614_v43 = vadd.f32 %v1202_v14, %v613_v42  ;;  %v807_v46 = vpop.f32.mrb[25].mxu0 }
 0x1e9   :  { %689 = vst [vmem:[%s1307_s3 + $0x60] sm:$0xff] %v614_v43 }
 0x1ea   :  { %v673_v47 = vpop.f32.mrb[22].mxu1 }
 0x1eb   :  { %v674_v48 = vadd.f32 %v1202_v14, %v673_v47  ;;  %v843_v49 = vpop.f32.mrb[23].mxu1 }
 0x1ed   :  { %701 = vst [vmem:[%s1307_s3 + $0xc0] sm:$0xff] %v674_v48 }

</bundles_post_ra>
